<compile_context>
chip_gen: v6e
topology: v6e:2x2x1
jax: 0.10.0
libtpu: 0.0.40
codegen_flags: <defaults>
</compile_context>

<pallas_src>
import math

import jax
import jax.numpy as jnp
from jax.experimental import pallas as pl
from jax.experimental.pallas import tpu as pltpu


def _vmem_capacity_bytes():
    """Physical VMEM per core; conservative fallback if the query fails."""
    try:
        info = pltpu.get_tpu_info()
        cap = int(getattr(info, "vmem_capacity_bytes", 0))
        if cap > 0:
            return cap
    except Exception:
        pass
    return 64 << 20  # v7x per-core physical VMEM (most conservative)


def _choose_frames_per_block(F, tb, N, itemsize, budget_bytes):
    """Frames per grid step T.

    Capped by (a) the VMEM budget for the double-buffered input+output blocks
    and (b) a program-size cap on the fully-unrolled frame loop.  Prefers
    T == F (single chunk), then a divisor of F (no tail chunk), then the
    largest lane-aligned T (tail handled by a dedicated pl.when branch).
    """
    # Program-size cap: ~vreg-ops per chunk stays bounded as tb*N grows.
    vregs_per_frame = max(1, (tb * N * 4) // 4096)
    max_unrolled = max(8, min(64, 4096 // vregs_per_frame))

    bytes_per_frame = 4 * tb * N * itemsize  # 2 buffers x (in + out) per frame row
    t_budget = max(1, budget_bytes // max(bytes_per_frame, 1))
    t_max = min(F, max_unrolled, t_budget)
    if t_max >= F:
        return F
    # Lane rule: the flattened column block (T*N) must be a multiple of 128
    # (T == F is exempt because it equals the full array extent).
    lane_mult = 128 // math.gcd(N, 128)
    t_max = max(lane_mult, (t_max // lane_mult) * lane_mult)
    lo = max(lane_mult, t_max // 2)
    for t in range(t_max, lo - 1, -1):  # prefer a divisor of F -> no tail chunk
        if t % lane_mult == 0 and F % t == 0:
            return t
    return t_max


def _make_kernel(adaptation_rate, recovery_rate, T, F, N):
    decay = 1.0 - recovery_rate
    num_chunks = -(-F // T)
    t_tail = F - (num_chunks - 1) * T

    def kernel(param_ref, x_ref, out_ref, state_ref):
        c = pl.program_id(1)  # frame-chunk index (sequential / "arbitrary")

        # (Re)initialize the resident adaptation state for this batch block.
        @pl.when(c == 0)
        def _():
            state_ref[...] = jnp.broadcast_to(
                param_ref[...].astype(jnp.float32), state_ref.shape)

        def run_frames(n_frames):
            # State carried in registers across the unrolled frame loop:
            # one load + one store of the (tb, N) resident block per chunk.
            adapt = state_ref[...]  # (tb, N) f32, batch on sublanes
            for t in range(n_frames):
                col = t * N  # static, lane-aligned when N % 128 == 0
                frame = x_ref[:, pl.ds(col, N)].astype(jnp.float32)   # (tb, N)
                out = jnp.maximum(frame - adapt, 0.0)                 # clamp(min=0)
                out_ref[:, pl.ds(col, N)] = out.astype(out_ref.dtype)
                adapt = (adapt + adaptation_rate * out) * decay
            state_ref[...] = adapt

        if F % T == 0:
            # Every chunk is full: single unmasked path, no padded frames ever.
            run_frames(T)
        else:
            @pl.when(c < num_chunks - 1)
            def _():
                run_frames(T)

            @pl.when(c == num_chunks - 1)
            def _():
                run_frames(t_tail)  # only valid frames touched; padding untouched

    return kernel


def adaptive_layer_forward(x, adaptation_param, adaptation_rate=0.3,
                           recovery_rate=0.1, batch_blocks=None,
                           frames_per_block=None):
    """x: (B, F, N); adaptation_param: (1, N).

    Returns (adapted_output (B, F, N), new_adaptation_param (1, N)).
    """
    B, F, N = x.shape
    itemsize = jnp.dtype(x.dtype).itemsize

    if batch_blocks is None:
        # Shape-aware batch split: only worthwhile when there are two
        # TensorCores to feed AND each half still gets big, sublane-packed
        # blocks.  Small/medium problems (and single-TC v5e/v6e) use 1 block.
        total_bytes = B * F * N * itemsize
        batch_blocks = 2 if (B % 16 == 0 and total_bytes >= (32 << 20)) else 1
    assert B % batch_blocks == 0
    tb = B // batch_blocks
    assert tb == B or tb % 8 == 0, "batch block must be full batch or multiple of 8"

    vmem_cap = _vmem_capacity_bytes()
    block_budget = max(8 << 20, (3 * vmem_cap) // 8)   # ~48 MiB v5e/v6e, ~24 MiB v7x
    vmem_limit = int(min((3 * vmem_cap) // 4, block_budget + (16 << 20)))

    if frames_per_block is None:
        T = _choose_frames_per_block(F, tb, N, itemsize, block_budget)
    else:
        T = min(int(frames_per_block), F)
    num_chunks = -(-F // T)

    # Flattened (B, F*N) view: frames become lane-aligned column slices so each
    # per-frame tile is a dense (tb, N) vreg block (batch on sublanes).  The
    # reshapes are free row-major bitcasts -- no extra HBM passes.
    x2 = x.reshape(B, F * N)
    param = adaptation_param.reshape(1, N)

    kernel = _make_kernel(float(adaptation_rate), float(recovery_rate), T, F, N)

    out2, state = pl.pallas_call(
        kernel,
        out_shape=(
            jax.ShapeDtypeStruct((B, F * N), x.dtype),
            jax.ShapeDtypeStruct((B, N), jnp.float32),
        ),
        grid_spec=pltpu.PrefetchScalarGridSpec(
            num_scalar_prefetch=0,
            grid=(batch_blocks, num_chunks),
            in_specs=[
                pl.BlockSpec((1, N), lambda b, c: (0, 0)),        # adaptation param
                pl.BlockSpec((tb, T * N), lambda b, c: (b, c)),   # x frame chunk
            ],
            out_specs=[
                pl.BlockSpec((tb, T * N), lambda b, c: (b, c)),   # output chunk
                pl.BlockSpec((tb, N), lambda b, c: (b, 0)),       # resident adaptation state
            ],
        ),
        compiler_params=pltpu.CompilerParams(
            dimension_semantics=("parallel", "arbitrary"),  # batch ||, frames sequential
            vmem_limit_bytes=vmem_limit,
        ),
    )(param, x2)

    out = out2.reshape(B, F, N)
    new_param = jnp.mean(state, axis=0, keepdims=True).astype(adaptation_param.dtype)
    # TODO(synk): the PyTorch module mutates its nn.Parameter in place; there is
    # no in-place parameter side effect in JAX, so the updated value is returned.
    return out, new_param


def adaptive_layer_ref(x, adaptation_param, adaptation_rate=0.3,
                       recovery_rate=0.1):
    """Pure-JAX reference mirroring the PyTorch loop."""
    B, F, N = x.shape
    adaptation = jnp.broadcast_to(adaptation_param.astype(jnp.float32), (B, N))
    outs = []
    for i in range(F):
        frame = x[:, i, :].astype(jnp.float32)
        out = jnp.maximum(frame - adaptation, 0.0)
        adaptation = (adaptation + adaptation_rate * out) * (1.0 - recovery_rate)
        outs.append(out.astype(x.dtype))
    return jnp.stack(outs, axis=1), jnp.mean(adaptation, axis=0, keepdims=True)


if __name__ == "__main__":
    # Small shapes consistent with the forward: (batch, num_frames, num_features).
    B, F, N = 4, 20, 128

    key = jax.random.PRNGKey(0)
    x = jax.random.normal(key, (B, F, N), dtype=jnp.float32)
    adaptation_param = jnp.zeros((1, N), dtype=jnp.float32)  # zeros(1, num_features)

    ref_out, ref_param = adaptive_layer_ref(x, adaptation_param)

    # Default path: T == F -> single chunk, single batch block, grid (1, 1).
    out, new_param = adaptive_layer_forward(x, adaptation_param)
    out = jax.block_until_ready(out)
    new_param = jax.block_until_ready(new_param)
    assert out.shape == (B, F, N) and new_param.shape == (1, N)
    assert jnp.allclose(out, ref_out, atol=1e-5, rtol=1e-5)
    assert jnp.allclose(new_param, ref_param, atol=1e-5, rtol=1e-5)

    # Chunked path: force multiple frame chunks plus a partial tail chunk
    # (exercises the state carry across chunks and the tail pl.when branch).
    out_c, new_param_c = adaptive_layer_forward(x, adaptation_param,
                                                frames_per_block=8)
    out_c = jax.block_until_ready(out_c)
    new_param_c = jax.block_until_ready(new_param_c)
    assert jnp.allclose(out_c, ref_out, atol=1e-5, rtol=1e-5)
    assert jnp.allclose(new_param_c, ref_param, atol=1e-5, rtol=1e-5)

    print("KERNEL_OK")
</pallas_src>

<mosaic_0001>
module attributes {stable_mosaic.version = 11 : i64} {
  func.func @kernel(%arg0: i32, %arg1: i32, %arg2: memref<1x128xf32, #tpu.memory_space<vmem>>, %arg3: memref<4x2560xf32, #tpu.memory_space<vmem>>, %arg4: memref<4x2560xf32, #tpu.memory_space<vmem>>, %arg5: memref<4x128xf32, #tpu.memory_space<vmem>>) attributes {dimension_semantics = [#tpu.dimension_semantics<parallel>, #tpu.dimension_semantics<arbitrary>], iteration_bounds = array<i64: 1, 1>, scalar_prefetch = 0 : i64, scratch_operands = 0 : i64, tpu.core_type = #tpu.core_type<tc>, window_params = [{pipeline_mode = #tpu.pipeline_mode<synchronous>, transform_indices = @transform_0, window_bounds = array<i64: 1, 128>}, {transform_indices = @transform_1, window_bounds = array<i64: 4, 2560>}, {transform_indices = @transform_2, window_bounds = array<i64: 4, 2560>}, {transform_indices = @transform_3, window_bounds = array<i64: 4, 128>}]} {
    %c0_i32 = arith.constant 0 : i32
    %0 = arith.cmpi eq, %arg1, %c0_i32 : i32
    %1 = arith.extui %0 : i1 to i32
    %c0_i32_0 = arith.constant 0 : i32
    %2 = arith.cmpi ne, %1, %c0_i32_0 : i32
    scf.if %2 {
      %c0_124 = arith.constant 0 : index
      %c0_125 = arith.constant 0 : index
      %205 = vector.load %arg2[%c0_124, %c0_125] : memref<1x128xf32, #tpu.memory_space<vmem>>, vector<1x128xf32>
      %206 = vector.shape_cast %205 : vector<1x128xf32> to vector<1x128xf32>
      %207 = vector.broadcast %206 : vector<1x128xf32> to vector<4x128xf32>
      %c0_126 = arith.constant 0 : index
      %c0_127 = arith.constant 0 : index
      %208 = vector.load %arg5[%c0_126, %c0_127] : memref<4x128xf32, #tpu.memory_space<vmem>>, vector<4x128xf32>
      tpu.vector_store %arg5[%c0_126, %c0_127], %207 {strides = array<i32>} : memref<4x128xf32, #tpu.memory_space<vmem>>, vector<4x128xf32>,
    } else {
    }
    %c0 = arith.constant 0 : index
    %c0_1 = arith.constant 0 : index
    %3 = vector.load %arg5[%c0, %c0_1] : memref<4x128xf32, #tpu.memory_space<vmem>>, vector<4x128xf32>
    %c0_2 = arith.constant 0 : index
    %c0_3 = arith.constant 0 : index
    %4 = vector.load %arg3[%c0_2, %c0_3] : memref<4x2560xf32, #tpu.memory_space<vmem>>, vector<4x128xf32>
    %5 = arith.subf %4, %3 : vector<4x128xf32>
    %cst = arith.constant 0.000000e+00 : f32
    %6 = vector.broadcast %cst : f32 to vector<4x128xf32>
    %7 = arith.maximumf %5, %6 : vector<4x128xf32>
    %c0_4 = arith.constant 0 : index
    %c0_5 = arith.constant 0 : index
    %8 = vector.load %arg4[%c0_4, %c0_5] : memref<4x2560xf32, #tpu.memory_space<vmem>>, vector<4x128xf32>
    tpu.vector_store %arg4[%c0_4, %c0_5], %7 {strides = array<i32>} : memref<4x2560xf32, #tpu.memory_space<vmem>>, vector<4x128xf32>,
    %cst_6 = arith.constant 3.000000e-01 : f32
    %9 = vector.broadcast %cst_6 : f32 to vector<4x128xf32>
    %10 = arith.mulf %9, %7 : vector<4x128xf32>
    %11 = arith.addf %3, %10 : vector<4x128xf32>
    %cst_7 = arith.constant 0.899999976 : f32
    %12 = vector.broadcast %cst_7 : f32 to vector<4x128xf32>
    %13 = arith.mulf %11, %12 : vector<4x128xf32>
    %c0_8 = arith.constant 0 : index
    %c128 = arith.constant 128 : index
    %14 = vector.load %arg3[%c0_8, %c128] : memref<4x2560xf32, #tpu.memory_space<vmem>>, vector<4x128xf32>
    %15 = arith.subf %14, %13 : vector<4x128xf32>
    %cst_9 = arith.constant 0.000000e+00 : f32
    %16 = vector.broadcast %cst_9 : f32 to vector<4x128xf32>
    %17 = arith.maximumf %15, %16 : vector<4x128xf32>
    %c0_10 = arith.constant 0 : index
    %c128_11 = arith.constant 128 : index
    %18 = vector.load %arg4[%c0_10, %c128_11] : memref<4x2560xf32, #tpu.memory_space<vmem>>, vector<4x128xf32>
    tpu.vector_store %arg4[%c0_10, %c128_11], %17 {strides = array<i32>} : memref<4x2560xf32, #tpu.memory_space<vmem>>, vector<4x128xf32>,
    %cst_12 = arith.constant 3.000000e-01 : f32
    %19 = vector.broadcast %cst_12 : f32 to vector<4x128xf32>
    %20 = arith.mulf %19, %17 : vector<4x128xf32>
    %21 = arith.addf %13, %20 : vector<4x128xf32>
    %cst_13 = arith.constant 0.899999976 : f32
    %22 = vector.broadcast %cst_13 : f32 to vector<4x128xf32>
    %23 = arith.mulf %21, %22 : vector<4x128xf32>
    %c0_14 = arith.constant 0 : index
    %c256 = arith.constant 256 : index
    %24 = vector.load %arg3[%c0_14, %c256] : memref<4x2560xf32, #tpu.memory_space<vmem>>, vector<4x128xf32>
    %25 = arith.subf %24, %23 : vector<4x128xf32>
    %cst_15 = arith.constant 0.000000e+00 : f32
    %26 = vector.broadcast %cst_15 : f32 to vector<4x128xf32>
    %27 = arith.maximumf %25, %26 : vector<4x128xf32>
    %c0_16 = arith.constant 0 : index
    %c256_17 = arith.constant 256 : index
    %28 = vector.load %arg4[%c0_16, %c256_17] : memref<4x2560xf32, #tpu.memory_space<vmem>>, vector<4x128xf32>
    tpu.vector_store %arg4[%c0_16, %c256_17], %27 {strides = array<i32>} : memref<4x2560xf32, #tpu.memory_space<vmem>>, vector<4x128xf32>,
    %cst_18 = arith.constant 3.000000e-01 : f32
    %29 = vector.broadcast %cst_18 : f32 to vector<4x128xf32>
    %30 = arith.mulf %29, %27 : vector<4x128xf32>
    %31 = arith.addf %23, %30 : vector<4x128xf32>
    %cst_19 = arith.constant 0.899999976 : f32
    %32 = vector.broadcast %cst_19 : f32 to vector<4x128xf32>
    %33 = arith.mulf %31, %32 : vector<4x128xf32>
    %c0_20 = arith.constant 0 : index
    %c384 = arith.constant 384 : index
    %34 = vector.load %arg3[%c0_20, %c384] : memref<4x2560xf32, #tpu.memory_space<vmem>>, vector<4x128xf32>
    %35 = arith.subf %34, %33 : vector<4x128xf32>
    %cst_21 = arith.constant 0.000000e+00 : f32
    %36 = vector.broadcast %cst_21 : f32 to vector<4x128xf32>
    %37 = arith.maximumf %35, %36 : vector<4x128xf32>
    %c0_22 = arith.constant 0 : index
    %c384_23 = arith.constant 384 : index
    %38 = vector.load %arg4[%c0_22, %c384_23] : memref<4x2560xf32, #tpu.memory_space<vmem>>, vector<4x128xf32>
    tpu.vector_store %arg4[%c0_22, %c384_23], %37 {strides = array<i32>} : memref<4x2560xf32, #tpu.memory_space<vmem>>, vector<4x128xf32>,
    %cst_24 = arith.constant 3.000000e-01 : f32
    %39 = vector.broadcast %cst_24 : f32 to vector<4x128xf32>
    %40 = arith.mulf %39, %37 : vector<4x128xf32>
    %41 = arith.addf %33, %40 : vector<4x128xf32>
    %cst_25 = arith.constant 0.899999976 : f32
    %42 = vector.broadcast %cst_25 : f32 to vector<4x128xf32>
    %43 = arith.mulf %41, %42 : vector<4x128xf32>
    %c0_26 = arith.constant 0 : index
    %c512 = arith.constant 512 : index
    %44 = vector.load %arg3[%c0_26, %c512] : memref<4x2560xf32, #tpu.memory_space<vmem>>, vector<4x128xf32>
    %45 = arith.subf %44, %43 : vector<4x128xf32>
    %cst_27 = arith.constant 0.000000e+00 : f32
    %46 = vector.broadcast %cst_27 : f32 to vector<4x128xf32>
    %47 = arith.maximumf %45, %46 : vector<4x128xf32>
    %c0_28 = arith.constant 0 : index
    %c512_29 = arith.constant 512 : index
    %48 = vector.load %arg4[%c0_28, %c512_29] : memref<4x2560xf32, #tpu.memory_space<vmem>>, vector<4x128xf32>
    tpu.vector_store %arg4[%c0_28, %c512_29], %47 {strides = array<i32>} : memref<4x2560xf32, #tpu.memory_space<vmem>>, vector<4x128xf32>,
    %cst_30 = arith.constant 3.000000e-01 : f32
    %49 = vector.broadcast %cst_30 : f32 to vector<4x128xf32>
    %50 = arith.mulf %49, %47 : vector<4x128xf32>
    %51 = arith.addf %43, %50 : vector<4x128xf32>
    %cst_31 = arith.constant 0.899999976 : f32
    %52 = vector.broadcast %cst_31 : f32 to vector<4x128xf32>
    %53 = arith.mulf %51, %52 : vector<4x128xf32>
    %c0_32 = arith.constant 0 : index
    %c640 = arith.constant 640 : index
    %54 = vector.load %arg3[%c0_32, %c640] : memref<4x2560xf32, #tpu.memory_space<vmem>>, vector<4x128xf32>
    %55 = arith.subf %54, %53 : vector<4x128xf32>
    %cst_33 = arith.constant 0.000000e+00 : f32
    %56 = vector.broadcast %cst_33 : f32 to vector<4x128xf32>
    %57 = arith.maximumf %55, %56 : vector<4x128xf32>
    %c0_34 = arith.constant 0 : index
    %c640_35 = arith.constant 640 : index
    %58 = vector.load %arg4[%c0_34, %c640_35] : memref<4x2560xf32, #tpu.memory_space<vmem>>, vector<4x128xf32>
    tpu.vector_store %arg4[%c0_34, %c640_35], %57 {strides = array<i32>} : memref<4x2560xf32, #tpu.memory_space<vmem>>, vector<4x128xf32>,
    %cst_36 = arith.constant 3.000000e-01 : f32
    %59 = vector.broadcast %cst_36 : f32 to vector<4x128xf32>
    %60 = arith.mulf %59, %57 : vector<4x128xf32>
    %61 = arith.addf %53, %60 : vector<4x128xf32>
    %cst_37 = arith.constant 0.899999976 : f32
    %62 = vector.broadcast %cst_37 : f32 to vector<4x128xf32>
    %63 = arith.mulf %61, %62 : vector<4x128xf32>
    %c0_38 = arith.constant 0 : index
    %c768 = arith.constant 768 : index
    %64 = vector.load %arg3[%c0_38, %c768] : memref<4x2560xf32, #tpu.memory_space<vmem>>, vector<4x128xf32>
    %65 = arith.subf %64, %63 : vector<4x128xf32>
    %cst_39 = arith.constant 0.000000e+00 : f32
    %66 = vector.broadcast %cst_39 : f32 to vector<4x128xf32>
    %67 = arith.maximumf %65, %66 : vector<4x128xf32>
    %c0_40 = arith.constant 0 : index
    %c768_41 = arith.constant 768 : index
    %68 = vector.load %arg4[%c0_40, %c768_41] : memref<4x2560xf32, #tpu.memory_space<vmem>>, vector<4x128xf32>
    tpu.vector_store %arg4[%c0_40, %c768_41], %67 {strides = array<i32>} : memref<4x2560xf32, #tpu.memory_space<vmem>>, vector<4x128xf32>,
    %cst_42 = arith.constant 3.000000e-01 : f32
    %69 = vector.broadcast %cst_42 : f32 to vector<4x128xf32>
    %70 = arith.mulf %69, %67 : vector<4x128xf32>
    %71 = arith.addf %63, %70 : vector<4x128xf32>
    %cst_43 = arith.constant 0.899999976 : f32
    %72 = vector.broadcast %cst_43 : f32 to vector<4x128xf32>
    %73 = arith.mulf %71, %72 : vector<4x128xf32>
    %c0_44 = arith.constant 0 : index
    %c896 = arith.constant 896 : index
    %74 = vector.load %arg3[%c0_44, %c896] : memref<4x2560xf32, #tpu.memory_space<vmem>>, vector<4x128xf32>
    %75 = arith.subf %74, %73 : vector<4x128xf32>
    %cst_45 = arith.constant 0.000000e+00 : f32
    %76 = vector.broadcast %cst_45 : f32 to vector<4x128xf32>
    %77 = arith.maximumf %75, %76 : vector<4x128xf32>
    %c0_46 = arith.constant 0 : index
    %c896_47 = arith.constant 896 : index
    %78 = vector.load %arg4[%c0_46, %c896_47] : memref<4x2560xf32, #tpu.memory_space<vmem>>, vector<4x128xf32>
    tpu.vector_store %arg4[%c0_46, %c896_47], %77 {strides = array<i32>} : memref<4x2560xf32, #tpu.memory_space<vmem>>, vector<4x128xf32>,
    %cst_48 = arith.constant 3.000000e-01 : f32
    %79 = vector.broadcast %cst_48 : f32 to vector<4x128xf32>
    %80 = arith.mulf %79, %77 : vector<4x128xf32>
    %81 = arith.addf %73, %80 : vector<4x128xf32>
    %cst_49 = arith.constant 0.899999976 : f32
    %82 = vector.broadcast %cst_49 : f32 to vector<4x128xf32>
    %83 = arith.mulf %81, %82 : vector<4x128xf32>
    %c0_50 = arith.constant 0 : index
    %c1024 = arith.constant 1024 : index
    %84 = vector.load %arg3[%c0_50, %c1024] : memref<4x2560xf32, #tpu.memory_space<vmem>>, vector<4x128xf32>
    %85 = arith.subf %84, %83 : vector<4x128xf32>
    %cst_51 = arith.constant 0.000000e+00 : f32
    %86 = vector.broadcast %cst_51 : f32 to vector<4x128xf32>
    %87 = arith.maximumf %85, %86 : vector<4x128xf32>
    %c0_52 = arith.constant 0 : index
    %c1024_53 = arith.constant 1024 : index
    %88 = vector.load %arg4[%c0_52, %c1024_53] : memref<4x2560xf32, #tpu.memory_space<vmem>>, vector<4x128xf32>
    tpu.vector_store %arg4[%c0_52, %c1024_53], %87 {strides = array<i32>} : memref<4x2560xf32, #tpu.memory_space<vmem>>, vector<4x128xf32>,
    %cst_54 = arith.constant 3.000000e-01 : f32
    %89 = vector.broadcast %cst_54 : f32 to vector<4x128xf32>
    %90 = arith.mulf %89, %87 : vector<4x128xf32>
    %91 = arith.addf %83, %90 : vector<4x128xf32>
    %cst_55 = arith.constant 0.899999976 : f32
    %92 = vector.broadcast %cst_55 : f32 to vector<4x128xf32>
    %93 = arith.mulf %91, %92 : vector<4x128xf32>
    %c0_56 = arith.constant 0 : index
    %c1152 = arith.constant 1152 : index
    %94 = vector.load %arg3[%c0_56, %c1152] : memref<4x2560xf32, #tpu.memory_space<vmem>>, vector<4x128xf32>
    %95 = arith.subf %94, %93 : vector<4x128xf32>
    %cst_57 = arith.constant 0.000000e+00 : f32
    %96 = vector.broadcast %cst_57 : f32 to vector<4x128xf32>
    %97 = arith.maximumf %95, %96 : vector<4x128xf32>
    %c0_58 = arith.constant 0 : index
    %c1152_59 = arith.constant 1152 : index
    %98 = vector.load %arg4[%c0_58, %c1152_59] : memref<4x2560xf32, #tpu.memory_space<vmem>>, vector<4x128xf32>
    tpu.vector_store %arg4[%c0_58, %c1152_59], %97 {strides = array<i32>} : memref<4x2560xf32, #tpu.memory_space<vmem>>, vector<4x128xf32>,
    %cst_60 = arith.constant 3.000000e-01 : f32
    %99 = vector.broadcast %cst_60 : f32 to vector<4x128xf32>
    %100 = arith.mulf %99, %97 : vector<4x128xf32>
    %101 = arith.addf %93, %100 : vector<4x128xf32>
    %cst_61 = arith.constant 0.899999976 : f32
    %102 = vector.broadcast %cst_61 : f32 to vector<4x128xf32>
    %103 = arith.mulf %101, %102 : vector<4x128xf32>
    %c0_62 = arith.constant 0 : index
    %c1280 = arith.constant 1280 : index
    %104 = vector.load %arg3[%c0_62, %c1280] : memref<4x2560xf32, #tpu.memory_space<vmem>>, vector<4x128xf32>
    %105 = arith.subf %104, %103 : vector<4x128xf32>
    %cst_63 = arith.constant 0.000000e+00 : f32
    %106 = vector.broadcast %cst_63 : f32 to vector<4x128xf32>
    %107 = arith.maximumf %105, %106 : vector<4x128xf32>
    %c0_64 = arith.constant 0 : index
    %c1280_65 = arith.constant 1280 : index
    %108 = vector.load %arg4[%c0_64, %c1280_65] : memref<4x2560xf32, #tpu.memory_space<vmem>>, vector<4x128xf32>
    tpu.vector_store %arg4[%c0_64, %c1280_65], %107 {strides = array<i32>} : memref<4x2560xf32, #tpu.memory_space<vmem>>, vector<4x128xf32>,
    %cst_66 = arith.constant 3.000000e-01 : f32
    %109 = vector.broadcast %cst_66 : f32 to vector<4x128xf32>
    %110 = arith.mulf %109, %107 : vector<4x128xf32>
    %111 = arith.addf %103, %110 : vector<4x128xf32>
    %cst_67 = arith.constant 0.899999976 : f32
    %112 = vector.broadcast %cst_67 : f32 to vector<4x128xf32>
    %113 = arith.mulf %111, %112 : vector<4x128xf32>
    %c0_68 = arith.constant 0 : index
    %c1408 = arith.constant 1408 : index
    %114 = vector.load %arg3[%c0_68, %c1408] : memref<4x2560xf32, #tpu.memory_space<vmem>>, vector<4x128xf32>
    %115 = arith.subf %114, %113 : vector<4x128xf32>
    %cst_69 = arith.constant 0.000000e+00 : f32
    %116 = vector.broadcast %cst_69 : f32 to vector<4x128xf32>
    %117 = arith.maximumf %115, %116 : vector<4x128xf32>
    %c0_70 = arith.constant 0 : index
    %c1408_71 = arith.constant 1408 : index
    %118 = vector.load %arg4[%c0_70, %c1408_71] : memref<4x2560xf32, #tpu.memory_space<vmem>>, vector<4x128xf32>
    tpu.vector_store %arg4[%c0_70, %c1408_71], %117 {strides = array<i32>} : memref<4x2560xf32, #tpu.memory_space<vmem>>, vector<4x128xf32>,
    %cst_72 = arith.constant 3.000000e-01 : f32
    %119 = vector.broadcast %cst_72 : f32 to vector<4x128xf32>
    %120 = arith.mulf %119, %117 : vector<4x128xf32>
    %121 = arith.addf %113, %120 : vector<4x128xf32>
    %cst_73 = arith.constant 0.899999976 : f32
    %122 = vector.broadcast %cst_73 : f32 to vector<4x128xf32>
    %123 = arith.mulf %121, %122 : vector<4x128xf32>
    %c0_74 = arith.constant 0 : index
    %c1536 = arith.constant 1536 : index
    %124 = vector.load %arg3[%c0_74, %c1536] : memref<4x2560xf32, #tpu.memory_space<vmem>>, vector<4x128xf32>
    %125 = arith.subf %124, %123 : vector<4x128xf32>
    %cst_75 = arith.constant 0.000000e+00 : f32
    %126 = vector.broadcast %cst_75 : f32 to vector<4x128xf32>
    %127 = arith.maximumf %125, %126 : vector<4x128xf32>
    %c0_76 = arith.constant 0 : index
    %c1536_77 = arith.constant 1536 : index
    %128 = vector.load %arg4[%c0_76, %c1536_77] : memref<4x2560xf32, #tpu.memory_space<vmem>>, vector<4x128xf32>
    tpu.vector_store %arg4[%c0_76, %c1536_77], %127 {strides = array<i32>} : memref<4x2560xf32, #tpu.memory_space<vmem>>, vector<4x128xf32>,
    %cst_78 = arith.constant 3.000000e-01 : f32
    %129 = vector.broadcast %cst_78 : f32 to vector<4x128xf32>
    %130 = arith.mulf %129, %127 : vector<4x128xf32>
    %131 = arith.addf %123, %130 : vector<4x128xf32>
    %cst_79 = arith.constant 0.899999976 : f32
    %132 = vector.broadcast %cst_79 : f32 to vector<4x128xf32>
    %133 = arith.mulf %131, %132 : vector<4x128xf32>
    %c0_80 = arith.constant 0 : index
    %c1664 = arith.constant 1664 : index
    %134 = vector.load %arg3[%c0_80, %c1664] : memref<4x2560xf32, #tpu.memory_space<vmem>>, vector<4x128xf32>
    %135 = arith.subf %134, %133 : vector<4x128xf32>
    %cst_81 = arith.constant 0.000000e+00 : f32
    %136 = vector.broadcast %cst_81 : f32 to vector<4x128xf32>
    %137 = arith.maximumf %135, %136 : vector<4x128xf32>
    %c0_82 = arith.constant 0 : index
    %c1664_83 = arith.constant 1664 : index
    %138 = vector.load %arg4[%c0_82, %c1664_83] : memref<4x2560xf32, #tpu.memory_space<vmem>>, vector<4x128xf32>
    tpu.vector_store %arg4[%c0_82, %c1664_83], %137 {strides = array<i32>} : memref<4x2560xf32, #tpu.memory_space<vmem>>, vector<4x128xf32>,
    %cst_84 = arith.constant 3.000000e-01 : f32
    %139 = vector.broadcast %cst_84 : f32 to vector<4x128xf32>
    %140 = arith.mulf %139, %137 : vector<4x128xf32>
    %141 = arith.addf %133, %140 : vector<4x128xf32>
    %cst_85 = arith.constant 0.899999976 : f32
    %142 = vector.broadcast %cst_85 : f32 to vector<4x128xf32>
    %143 = arith.mulf %141, %142 : vector<4x128xf32>
    %c0_86 = arith.constant 0 : index
    %c1792 = arith.constant 1792 : index
    %144 = vector.load %arg3[%c0_86, %c1792] : memref<4x2560xf32, #tpu.memory_space<vmem>>, vector<4x128xf32>
    %145 = arith.subf %144, %143 : vector<4x128xf32>
    %cst_87 = arith.constant 0.000000e+00 : f32
    %146 = vector.broadcast %cst_87 : f32 to vector<4x128xf32>
    %147 = arith.maximumf %145, %146 : vector<4x128xf32>
    %c0_88 = arith.constant 0 : index
    %c1792_89 = arith.constant 1792 : index
    %148 = vector.load %arg4[%c0_88, %c1792_89] : memref<4x2560xf32, #tpu.memory_space<vmem>>, vector<4x128xf32>
    tpu.vector_store %arg4[%c0_88, %c1792_89], %147 {strides = array<i32>} : memref<4x2560xf32, #tpu.memory_space<vmem>>, vector<4x128xf32>,
    %cst_90 = arith.constant 3.000000e-01 : f32
    %149 = vector.broadcast %cst_90 : f32 to vector<4x128xf32>
    %150 = arith.mulf %149, %147 : vector<4x128xf32>
    %151 = arith.addf %143, %150 : vector<4x128xf32>
    %cst_91 = arith.constant 0.899999976 : f32
    %152 = vector.broadcast %cst_91 : f32 to vector<4x128xf32>
    %153 = arith.mulf %151, %152 : vector<4x128xf32>
    %c0_92 = arith.constant 0 : index
    %c1920 = arith.constant 1920 : index
    %154 = vector.load %arg3[%c0_92, %c1920] : memref<4x2560xf32, #tpu.memory_space<vmem>>, vector<4x128xf32>
    %155 = arith.subf %154, %153 : vector<4x128xf32>
    %cst_93 = arith.constant 0.000000e+00 : f32
    %156 = vector.broadcast %cst_93 : f32 to vector<4x128xf32>
    %157 = arith.maximumf %155, %156 : vector<4x128xf32>
    %c0_94 = arith.constant 0 : index
    %c1920_95 = arith.constant 1920 : index
    %158 = vector.load %arg4[%c0_94, %c1920_95] : memref<4x2560xf32, #tpu.memory_space<vmem>>, vector<4x128xf32>
    tpu.vector_store %arg4[%c0_94, %c1920_95], %157 {strides = array<i32>} : memref<4x2560xf32, #tpu.memory_space<vmem>>, vector<4x128xf32>,
    %cst_96 = arith.constant 3.000000e-01 : f32
    %159 = vector.broadcast %cst_96 : f32 to vector<4x128xf32>
    %160 = arith.mulf %159, %157 : vector<4x128xf32>
    %161 = arith.addf %153, %160 : vector<4x128xf32>
    %cst_97 = arith.constant 0.899999976 : f32
    %162 = vector.broadcast %cst_97 : f32 to vector<4x128xf32>
    %163 = arith.mulf %161, %162 : vector<4x128xf32>
    %c0_98 = arith.constant 0 : index
    %c2048 = arith.constant 2048 : index
    %164 = vector.load %arg3[%c0_98, %c2048] : memref<4x2560xf32, #tpu.memory_space<vmem>>, vector<4x128xf32>
    %165 = arith.subf %164, %163 : vector<4x128xf32>
    %cst_99 = arith.constant 0.000000e+00 : f32
    %166 = vector.broadcast %cst_99 : f32 to vector<4x128xf32>
    %167 = arith.maximumf %165, %166 : vector<4x128xf32>
    %c0_100 = arith.constant 0 : index
    %c2048_101 = arith.constant 2048 : index
    %168 = vector.load %arg4[%c0_100, %c2048_101] : memref<4x2560xf32, #tpu.memory_space<vmem>>, vector<4x128xf32>
    tpu.vector_store %arg4[%c0_100, %c2048_101], %167 {strides = array<i32>} : memref<4x2560xf32, #tpu.memory_space<vmem>>, vector<4x128xf32>,
    %cst_102 = arith.constant 3.000000e-01 : f32
    %169 = vector.broadcast %cst_102 : f32 to vector<4x128xf32>
    %170 = arith.mulf %169, %167 : vector<4x128xf32>
    %171 = arith.addf %163, %170 : vector<4x128xf32>
    %cst_103 = arith.constant 0.899999976 : f32
    %172 = vector.broadcast %cst_103 : f32 to vector<4x128xf32>
    %173 = arith.mulf %171, %172 : vector<4x128xf32>
    %c0_104 = arith.constant 0 : index
    %c2176 = arith.constant 2176 : index
    %174 = vector.load %arg3[%c0_104, %c2176] : memref<4x2560xf32, #tpu.memory_space<vmem>>, vector<4x128xf32>
    %175 = arith.subf %174, %173 : vector<4x128xf32>
    %cst_105 = arith.constant 0.000000e+00 : f32
    %176 = vector.broadcast %cst_105 : f32 to vector<4x128xf32>
    %177 = arith.maximumf %175, %176 : vector<4x128xf32>
    %c0_106 = arith.constant 0 : index
    %c2176_107 = arith.constant 2176 : index
    %178 = vector.load %arg4[%c0_106, %c2176_107] : memref<4x2560xf32, #tpu.memory_space<vmem>>, vector<4x128xf32>
    tpu.vector_store %arg4[%c0_106, %c2176_107], %177 {strides = array<i32>} : memref<4x2560xf32, #tpu.memory_space<vmem>>, vector<4x128xf32>,
    %cst_108 = arith.constant 3.000000e-01 : f32
    %179 = vector.broadcast %cst_108 : f32 to vector<4x128xf32>
    %180 = arith.mulf %179, %177 : vector<4x128xf32>
    %181 = arith.addf %173, %180 : vector<4x128xf32>
    %cst_109 = arith.constant 0.899999976 : f32
    %182 = vector.broadcast %cst_109 : f32 to vector<4x128xf32>
    %183 = arith.mulf %181, %182 : vector<4x128xf32>
    %c0_110 = arith.constant 0 : index
    %c2304 = arith.constant 2304 : index
    %184 = vector.load %arg3[%c0_110, %c2304] : memref<4x2560xf32, #tpu.memory_space<vmem>>, vector<4x128xf32>
    %185 = arith.subf %184, %183 : vector<4x128xf32>
    %cst_111 = arith.constant 0.000000e+00 : f32
    %186 = vector.broadcast %cst_111 : f32 to vector<4x128xf32>
    %187 = arith.maximumf %185, %186 : vector<4x128xf32>
    %c0_112 = arith.constant 0 : index
    %c2304_113 = arith.constant 2304 : index
    %188 = vector.load %arg4[%c0_112, %c2304_113] : memref<4x2560xf32, #tpu.memory_space<vmem>>, vector<4x128xf32>
    tpu.vector_store %arg4[%c0_112, %c2304_113], %187 {strides = array<i32>} : memref<4x2560xf32, #tpu.memory_space<vmem>>, vector<4x128xf32>,
    %cst_114 = arith.constant 3.000000e-01 : f32
    %189 = vector.broadcast %cst_114 : f32 to vector<4x128xf32>
    %190 = arith.mulf %189, %187 : vector<4x128xf32>
    %191 = arith.addf %183, %190 : vector<4x128xf32>
    %cst_115 = arith.constant 0.899999976 : f32
    %192 = vector.broadcast %cst_115 : f32 to vector<4x128xf32>
    %193 = arith.mulf %191, %192 : vector<4x128xf32>
    %c0_116 = arith.constant 0 : index
    %c2432 = arith.constant 2432 : index
    %194 = vector.load %arg3[%c0_116, %c2432] : memref<4x2560xf32, #tpu.memory_space<vmem>>, vector<4x128xf32>
    %195 = arith.subf %194, %193 : vector<4x128xf32>
    %cst_117 = arith.constant 0.000000e+00 : f32
    %196 = vector.broadcast %cst_117 : f32 to vector<4x128xf32>
    %197 = arith.maximumf %195, %196 : vector<4x128xf32>
    %c0_118 = arith.constant 0 : index
    %c2432_119 = arith.constant 2432 : index
    %198 = vector.load %arg4[%c0_118, %c2432_119] : memref<4x2560xf32, #tpu.memory_space<vmem>>, vector<4x128xf32>
    tpu.vector_store %arg4[%c0_118, %c2432_119], %197 {strides = array<i32>} : memref<4x2560xf32, #tpu.memory_space<vmem>>, vector<4x128xf32>,
    %cst_120 = arith.constant 3.000000e-01 : f32
    %199 = vector.broadcast %cst_120 : f32 to vector<4x128xf32>
    %200 = arith.mulf %199, %197 : vector<4x128xf32>
    %201 = arith.addf %193, %200 : vector<4x128xf32>
    %cst_121 = arith.constant 0.899999976 : f32
    %202 = vector.broadcast %cst_121 : f32 to vector<4x128xf32>
    %203 = arith.mulf %201, %202 : vector<4x128xf32>
    %c0_122 = arith.constant 0 : index
    %c0_123 = arith.constant 0 : index
    %204 = vector.load %arg5[%c0_122, %c0_123] : memref<4x128xf32, #tpu.memory_space<vmem>>, vector<4x128xf32>
    tpu.vector_store %arg5[%c0_122, %c0_123], %203 {strides = array<i32>} : memref<4x128xf32, #tpu.memory_space<vmem>>, vector<4x128xf32>,
    return
  }
  func.func @transform_0(%arg0: i32, %arg1: i32) -> (i32, i32) {
    %c0_i32 = arith.constant 0 : i32
    %c0_i32_0 = arith.constant 0 : i32
    %c0_i32_1 = arith.constant 0 : i32
    return %c0_i32, %c0_i32_0 : i32, i32
  }
  func.func @transform_1(%arg0: i32, %arg1: i32) -> (i32, i32) {
    %c0_i32 = arith.constant 0 : i32
    return %arg0, %arg1 : i32, i32
  }
  func.func @transform_2(%arg0: i32, %arg1: i32) -> (i32, i32) {
    %c0_i32 = arith.constant 0 : i32
    return %arg0, %arg1 : i32, i32
  }
  func.func @transform_3(%arg0: i32, %arg1: i32) -> (i32, i32) {
    %c0_i32 = arith.constant 0 : i32
    %c0_i32_0 = arith.constant 0 : i32
    return %arg0, %c0_i32 : i32, i32
  }
}

</mosaic_0001>

<bundles_post_ra>
// kernel: tpu_custom_call.1
= control target key start
LH: loop header
LB: loop body
LE: loop exit
PB: predicated region body
PF: predicated region fallthrough
CT: control target
= control target key end

     0   :  { %9 = vsyncpa [#allocation3], 0  ;;  %s352_s0 = inlined_call_operand.hbm [shape: f32[1,128], index: 0, kind: input, shape index: {}]   ;;  %s353_s1 = inlined_call_operand.hbm [shape: f32[4,2560], index: 1, kind: input, shape index: {}]   ;;  %s354_s2 = inlined_call_operand.hbm [shape: f32[4,2560], index: 2, kind: output, shape index: {0}]   ;;  %s355_s3 = inlined_call_operand.hbm [shape: f32[4,128], index: 3, kind: output, shape index: {1}]  }
   0x1   :  { %10 = vsyncpa [#allocation6], 0 }
   0x2   :  { %11 = vsyncpa [#allocation4], 0 }
   0x3   :  { %12 = vsyncpa [#allocation9], 0  ;;  %s316_s12 = smov [#allocation2]   ;;  %s317_s14 = smov [#allocation5]  }
   0x4   :  { %s19_s13 = sshll.u32 %s316_s12, 4  ;;  %s29_s15 = sshll.u32 %s317_s14, 4  ;;  %s20_s13 = int_to_ptr.vmem [resolvable:$true] %s19_s13  ;;  %s30_s15 = int_to_ptr.vmem [resolvable:$true] %s29_s15 }
   0x5   :  { %s236_s16 = scalar_lea.vmem %s20_s13, 16  ;;  %s240_s17 = scalar_lea.vmem %s20_s13, 32 }
   0x6   :  { %p237_p0 = scmp.ne.s32.totalorder %s20_s13, %s236_s16  ;;  %p241_p1 = scmp.lt.s32.totalorder %s20_s13, %s20_s13 }
   0x7   :  { %p242_p2 = scmp.lt.s32.totalorder %s240_s17, %s236_s16 }
   0x9   :  { %p243_p3 = por %p242_p2, %p241_p1 }
   0xb   :  { %p244_p4 = pnand %p243_p3, %p237_p0 }
   0xd   :  { %247 = shalt.err (!%p244_p4)
}
   0xe   :  { %22 = dma.hbm_to_vmem [thread:$0]  %s352_s0, 16, %s20_s13, [#allocation3]  }
   0xf   :  { %s256_s20 = scalar_lea.vmem %s30_s15, 1280  ;;  %p261_p6 = scmp.lt.s32.totalorder %s30_s15, %s30_s15 }
  0x10   :  { %p257_p5 = scmp.ne.s32.totalorder %s30_s15, %s256_s20  ;;  %p262_p7 = scmp.lt.s32.totalorder %s256_s20, %s256_s20 }
  0x12   :  { %p263_p8 = por %p262_p7, %p261_p6 }
  0x14   :  { %p264_p9 = pnand %p263_p8, %p257_p5 }
  0x16   :  { %267 = shalt.err (!%p264_p9)
}
  0x17   :  { %32 = dma.hbm_to_vmem [thread:$0]  %s353_s1, 1280, %s30_s15, [#allocation6]  }
  0x18   :  { %308 = dma.done.wait [#allocation3], 16  }
  0x19   :  { %309 = vsyncadd [#allocation3], 4294967280 }
  0x1a   :  { %310 = dma.done.wait [#allocation6], 1280  }
  0x1b   :  { %311 = vsyncadd [#allocation6], 4294966016  ;;  %v223_v0 = vld [vmem:[#allocation2] ss:$0 sm:$0xff]  ;;  %v52_v1 = vld [vmem:[#allocation5] sm:$0xf] }
  0x1c   :  { %50 = vst [vmem:[#allocation8] sm:$0xf] %v223_v0  ;;  %v59_v7 = vld [vmem:[#allocation5 + $0x4] sm:$0xf]  ;;  %v66_v13 = vld [vmem:[#allocation5 + $0x8] sm:$0xf] }
  0x1d   :  { %v73_v19 = vld [vmem:[#allocation5 + $0xc] sm:$0xf]  ;;  %v80_v25 = vld [vmem:[#allocation5 + $0x10] sm:$0xf]  ;;  %v87_v31 = vld [vmem:[#allocation5 + $0x14] sm:$0xf] }
  0x1e   :  { %v94_v37 = vld [vmem:[#allocation5 + $0x18] sm:$0xf]  ;;  %v101_v43 = vld [vmem:[#allocation5 + $0x1c] sm:$0xf]  ;;  %v108_v49 = vld [vmem:[#allocation5 + $0x20] sm:$0xf] }
  0x1f   :  { %v115_v55 = vld [vmem:[#allocation5 + $0x24] sm:$0xf]  ;;  %v122_v61 = vld [vmem:[#allocation5 + $0x28] sm:$0xf]  ;;  %s318_s0 = smov [#allocation7]   ;;  %s319_s23 = smov [#allocation8]  }
  0x20   :  { %s199_s1 = sshll.u32 %s318_s0, 4  ;;  %s209_s24 = sshll.u32 %s319_s23, 4  ;;  %s200_s1 = int_to_ptr.vmem [resolvable:$true] %s199_s1  ;;  %s210_s24 = int_to_ptr.vmem [resolvable:$true] %s209_s24 }
  0x21   :  { %s268_s25 = scalar_lea.vmem %s200_s1, 1280  ;;  %p273_p11 = scmp.lt.s32.totalorder %s200_s1, %s200_s1 }
  0x22   :  { %p269_p10 = scmp.ne.s32.totalorder %s200_s1, %s268_s25  ;;  %p274_p12 = scmp.lt.s32.totalorder %s268_s25, %s268_s25 }
  0x23   :  { %v51_v2 = vld [vmem:[#allocation8] sm:$0xf] }
  0x24   :  { %v53_v3 = vsub.f32 %v52_v1, %v51_v2  ;;  %p275_p13 = por %p274_p12, %p273_p11 }
  0x26   :  { %v54_v4 = vmax.f32 %v53_v3, 0.0  ;;  %v129_v3 = vld [vmem:[#allocation5 + $0x2c] sm:$0xf]  ;;  %p276_p0 = pnand %p275_p13, %p269_p10 }
  0x28   :  { %55 = vst [vmem:[#allocation7] sm:$0xf] %v54_v4  ;;  %v56_v5 = vmul.f32 0.3, %v54_v4 }
  0x2a   :  { %v57_v6 = vadd.f32 %v56_v5, %v51_v2 }
  0x2c   :  { %v58_v8 = vmul.f32 0.9, %v57_v6 }
  0x2e   :  { %v60_v9 = vsub.f32 %v59_v7, %v58_v8 }
  0x30   :  { %v61_v10 = vmax.f32 %v60_v9, 0.0  ;;  %v136_v9 = vld [vmem:[#allocation5 + $0x30] sm:$0xf] }
  0x32   :  { %62 = vst [vmem:[#allocation7 + $0x4] sm:$0xf] %v61_v10  ;;  %v63_v11 = vmul.f32 0.3, %v61_v10 }
  0x34   :  { %v64_v12 = vadd.f32 %v63_v11, %v58_v8 }
  0x36   :  { %v65_v14 = vmul.f32 0.9, %v64_v12 }
  0x38   :  { %v67_v15 = vsub.f32 %v66_v13, %v65_v14 }
  0x3a   :  { %v68_v16 = vmax.f32 %v67_v15, 0.0  ;;  %v143_v15 = vld [vmem:[#allocation5 + $0x34] sm:$0xf] }
  0x3c   :  { %69 = vst [vmem:[#allocation7 + $0x8] sm:$0xf] %v68_v16  ;;  %v70_v17 = vmul.f32 0.3, %v68_v16 }
  0x3e   :  { %v71_v18 = vadd.f32 %v70_v17, %v65_v14 }
  0x40   :  { %v72_v20 = vmul.f32 0.9, %v71_v18 }
  0x42   :  { %v74_v21 = vsub.f32 %v73_v19, %v72_v20 }
  0x44   :  { %v75_v22 = vmax.f32 %v74_v21, 0.0  ;;  %v150_v21 = vld [vmem:[#allocation5 + $0x38] sm:$0xf] }
  0x46   :  { %76 = vst [vmem:[#allocation7 + $0xc] sm:$0xf] %v75_v22  ;;  %v77_v23 = vmul.f32 0.3, %v75_v22 }
  0x48   :  { %v78_v24 = vadd.f32 %v77_v23, %v72_v20 }
  0x4a   :  { %v79_v26 = vmul.f32 0.9, %v78_v24 }
  0x4c   :  { %v81_v27 = vsub.f32 %v80_v25, %v79_v26 }
  0x4e   :  { %v82_v28 = vmax.f32 %v81_v27, 0.0  ;;  %v157_v27 = vld [vmem:[#allocation5 + $0x3c] sm:$0xf] }
  0x50   :  { %83 = vst [vmem:[#allocation7 + $0x10] sm:$0xf] %v82_v28  ;;  %v84_v29 = vmul.f32 0.3, %v82_v28 }
  0x52   :  { %v85_v30 = vadd.f32 %v84_v29, %v79_v26 }
  0x54   :  { %v86_v32 = vmul.f32 0.9, %v85_v30 }
  0x56   :  { %v88_v33 = vsub.f32 %v87_v31, %v86_v32 }
  0x58   :  { %v89_v34 = vmax.f32 %v88_v33, 0.0  ;;  %v164_v33 = vld [vmem:[#allocation5 + $0x40] sm:$0xf] }
  0x5a   :  { %90 = vst [vmem:[#allocation7 + $0x14] sm:$0xf] %v89_v34  ;;  %v91_v35 = vmul.f32 0.3, %v89_v34 }
  0x5c   :  { %v92_v36 = vadd.f32 %v91_v35, %v86_v32 }
  0x5e   :  { %v93_v38 = vmul.f32 0.9, %v92_v36 }
  0x60   :  { %v95_v39 = vsub.f32 %v94_v37, %v93_v38 }
  0x62   :  { %v96_v40 = vmax.f32 %v95_v39, 0.0  ;;  %v171_v39 = vld [vmem:[#allocation5 + $0x44] sm:$0xf] }
  0x64   :  { %97 = vst [vmem:[#allocation7 + $0x18] sm:$0xf] %v96_v40  ;;  %v98_v41 = vmul.f32 0.3, %v96_v40 }
  0x66   :  { %v99_v42 = vadd.f32 %v98_v41, %v93_v38 }
  0x68   :  { %v100_v44 = vmul.f32 0.9, %v99_v42 }
  0x6a   :  { %v102_v45 = vsub.f32 %v101_v43, %v100_v44 }
  0x6c   :  { %v103_v46 = vmax.f32 %v102_v45, 0.0  ;;  %v178_v45 = vld [vmem:[#allocation5 + $0x48] sm:$0xf] }
  0x6e   :  { %104 = vst [vmem:[#allocation7 + $0x1c] sm:$0xf] %v103_v46  ;;  %v105_v47 = vmul.f32 0.3, %v103_v46 }
  0x70   :  { %v106_v48 = vadd.f32 %v105_v47, %v100_v44 }
  0x72   :  { %v107_v50 = vmul.f32 0.9, %v106_v48 }
  0x74   :  { %v109_v51 = vsub.f32 %v108_v49, %v107_v50 }
  0x76   :  { %v110_v52 = vmax.f32 %v109_v51, 0.0  ;;  %v185_v51 = vld [vmem:[#allocation5 + $0x4c] sm:$0xf] }
  0x78   :  { %111 = vst [vmem:[#allocation7 + $0x20] sm:$0xf] %v110_v52  ;;  %v112_v53 = vmul.f32 0.3, %v110_v52 }
  0x7a   :  { %v113_v54 = vadd.f32 %v112_v53, %v107_v50 }
  0x7c   :  { %v114_v56 = vmul.f32 0.9, %v113_v54 }
  0x7e   :  { %v116_v57 = vsub.f32 %v115_v55, %v114_v56 }
  0x80   :  { %v117_v58 = vmax.f32 %v116_v57, 0.0 }
  0x82   :  { %118 = vst [vmem:[#allocation7 + $0x24] sm:$0xf] %v117_v58  ;;  %v119_v59 = vmul.f32 0.3, %v117_v58 }
  0x84   :  { %v120_v60 = vadd.f32 %v119_v59, %v114_v56 }
  0x86   :  { %v121_v62 = vmul.f32 0.9, %v120_v60 }
  0x88   :  { %v123_v63 = vsub.f32 %v122_v61, %v121_v62 }
  0x8a   :  { %v124_v0 = vmax.f32 %v123_v63, 0.0 }
  0x8c   :  { %125 = vst [vmem:[#allocation7 + $0x28] sm:$0xf] %v124_v0  ;;  %v126_v1 = vmul.f32 0.3, %v124_v0 }
  0x8e   :  { %v127_v2 = vadd.f32 %v126_v1, %v121_v62 }
  0x90   :  { %v128_v4 = vmul.f32 0.9, %v127_v2 }
  0x92   :  { %v130_v5 = vsub.f32 %v129_v3, %v128_v4 }
  0x94   :  { %v131_v6 = vmax.f32 %v130_v5, 0.0 }
  0x96   :  { %132 = vst [vmem:[#allocation7 + $0x2c] sm:$0xf] %v131_v6  ;;  %v133_v7 = vmul.f32 0.3, %v131_v6 }
  0x98   :  { %v134_v8 = vadd.f32 %v133_v7, %v128_v4 }
  0x9a   :  { %v135_v10 = vmul.f32 0.9, %v134_v8 }
  0x9c   :  { %v137_v11 = vsub.f32 %v136_v9, %v135_v10 }
  0x9e   :  { %v138_v12 = vmax.f32 %v137_v11, 0.0 }
  0xa0   :  { %139 = vst [vmem:[#allocation7 + $0x30] sm:$0xf] %v138_v12  ;;  %v140_v13 = vmul.f32 0.3, %v138_v12 }
  0xa2   :  { %v141_v14 = vadd.f32 %v140_v13, %v135_v10 }
  0xa4   :  { %v142_v16 = vmul.f32 0.9, %v141_v14 }
  0xa6   :  { %v144_v17 = vsub.f32 %v143_v15, %v142_v16 }
  0xa8   :  { %v145_v18 = vmax.f32 %v144_v17, 0.0 }
  0xaa   :  { %146 = vst [vmem:[#allocation7 + $0x34] sm:$0xf] %v145_v18  ;;  %v147_v19 = vmul.f32 0.3, %v145_v18 }
  0xac   :  { %v148_v20 = vadd.f32 %v147_v19, %v142_v16 }
  0xae   :  { %v149_v22 = vmul.f32 0.9, %v148_v20 }
  0xb0   :  { %v151_v23 = vsub.f32 %v150_v21, %v149_v22 }
  0xb2   :  { %v152_v24 = vmax.f32 %v151_v23, 0.0 }
  0xb4   :  { %153 = vst [vmem:[#allocation7 + $0x38] sm:$0xf] %v152_v24  ;;  %v154_v25 = vmul.f32 0.3, %v152_v24 }
  0xb6   :  { %v155_v26 = vadd.f32 %v154_v25, %v149_v22 }
  0xb8   :  { %v156_v28 = vmul.f32 0.9, %v155_v26 }
  0xba   :  { %v158_v29 = vsub.f32 %v157_v27, %v156_v28 }
  0xbc   :  { %v159_v30 = vmax.f32 %v158_v29, 0.0 }
  0xbe   :  { %160 = vst [vmem:[#allocation7 + $0x3c] sm:$0xf] %v159_v30  ;;  %v161_v31 = vmul.f32 0.3, %v159_v30 }
  0xc0   :  { %v162_v32 = vadd.f32 %v161_v31, %v156_v28 }
  0xc2   :  { %v163_v34 = vmul.f32 0.9, %v162_v32 }
  0xc4   :  { %v165_v35 = vsub.f32 %v164_v33, %v163_v34 }
  0xc6   :  { %v166_v36 = vmax.f32 %v165_v35, 0.0 }
  0xc8   :  { %167 = vst [vmem:[#allocation7 + $0x40] sm:$0xf] %v166_v36  ;;  %v168_v37 = vmul.f32 0.3, %v166_v36 }
  0xca   :  { %v169_v38 = vadd.f32 %v168_v37, %v163_v34 }
  0xcc   :  { %v170_v40 = vmul.f32 0.9, %v169_v38 }
  0xce   :  { %v172_v41 = vsub.f32 %v171_v39, %v170_v40 }
  0xd0   :  { %v173_v42 = vmax.f32 %v172_v41, 0.0 }
  0xd2   :  { %174 = vst [vmem:[#allocation7 + $0x44] sm:$0xf] %v173_v42  ;;  %v175_v43 = vmul.f32 0.3, %v173_v42 }
  0xd4   :  { %v176_v44 = vadd.f32 %v175_v43, %v170_v40 }
  0xd6   :  { %v177_v46 = vmul.f32 0.9, %v176_v44 }
  0xd8   :  { %v179_v47 = vsub.f32 %v178_v45, %v177_v46 }
  0xda   :  { %v180_v48 = vmax.f32 %v179_v47, 0.0 }
  0xdc   :  { %181 = vst [vmem:[#allocation7 + $0x48] sm:$0xf] %v180_v48  ;;  %v182_v49 = vmul.f32 0.3, %v180_v48 }
  0xde   :  { %v183_v50 = vadd.f32 %v182_v49, %v177_v46 }
  0xe0   :  { %v184_v52 = vmul.f32 0.9, %v183_v50 }
  0xe2   :  { %v186_v53 = vsub.f32 %v185_v51, %v184_v52 }
  0xe4   :  { %v187_v54 = vmax.f32 %v186_v53, 0.0 }
  0xe6   :  { %188 = vst [vmem:[#allocation7 + $0x4c] sm:$0xf] %v187_v54  ;;  %v189_v55 = vmul.f32 0.3, %v187_v54 }
  0xe7   :  { %279 = shalt.err (!%p276_p0)
}
  0xe8   :  { %202 = dma.vmem_to_hbm [thread:$0]  %s200_s1, 1280, %s354_s2, [#allocation4]   ;;  %v190_v56 = vadd.f32 %v189_v55, %v184_v52 }
  0xe9   :  { %s288_s28 = scalar_lea.vmem %s210_s24, 64  ;;  %p293_p2 = scmp.lt.s32.totalorder %s210_s24, %s210_s24 }
  0xea   :  { %v191_v57 = vmul.f32 0.9, %v190_v56  ;;  %p289_p1 = scmp.ne.s32.totalorder %s210_s24, %s288_s28  ;;  %p294_p3 = scmp.lt.s32.totalorder %s288_s28, %s288_s28 }
  0xec   :  { %192 = vst [vmem:[#allocation8] sm:$0xf] %v191_v57  ;;  %p295_p4 = por %p294_p3, %p293_p2 }
  0xee   :  { %p296_p5 = pnand %p295_p4, %p289_p1 }
  0xf0   :  { %299 = shalt.err (!%p296_p5)
}
  0xf1   :  { %212 = dma.vmem_to_hbm [thread:$0]  %s210_s24, 64, %s355_s3, [#allocation9]  }
  0xf2   :  { %312 = dma.done.wait [#allocation4], 1280  }
  0xf3   :  { %313 = vsyncadd [#allocation4], 4294966016 }
  0xf4   :  { %314 = dma.done.wait [#allocation9], 64  }
  0xf5   :  { %315 = vsyncadd [#allocation9], 4294967232 }
  0xf6   :  { %219 = vsyncpa [#allocation3], 1 }
  0xf7   :  { %220 = vsyncpa [#allocation6], 1 }
  0xf8   :  { %221 = vsyncpa [#allocation4], 1 }
  0xf9   :  { %222 = vsyncpa [#allocation9], 1 }

</bundles_post_ra>
